<compile_context>
chip_gen: v7x
topology: tpu7x:2x2x1
jax: 0.10.0
libtpu: 0.0.40
codegen_flags: <defaults>
</compile_context>

<pallas_src>
import functools
import math

import jax
import jax.numpy as jnp
from jax.experimental import pallas as pl
from jax.experimental.pallas import tpu as pltpu


_EPS = 1e-5
_LANE = 128
_FUSED_VMEM_BUDGET = 8 * 1024 * 1024   # above this, use the tiled two-pass path
_TILE_M = 1024                          # lane-axis tile for the tiled pipeline

_PARAMS_SINGLE = pltpu.CompilerParams(
    dimension_semantics=("arbitrary",),
    vmem_limit_bytes=32 * 1024 * 1024,   # well inside v7x 64 MiB / v5e-v6e 128 MiB
)
_PARAMS_PARALLEL = pltpu.CompilerParams(
    dimension_semantics=("parallel",),   # independent M tiles -> megacore / v7x 2 TCs
    vmem_limit_bytes=32 * 1024 * 1024,
)


def _round_up(x, m):
    return (x + m - 1) // m * m


# ---------------------------------------------------------------------------
# Kernels (all outputs are (Cout, M_tile): M on the lane axis)
# ---------------------------------------------------------------------------
def _fused_conv_bn_relu_kernel(xcol_ref, w_ref, g_ref, b_ref, out_ref, *, eps, inv_m):
    # xcol_ref: (K, Mp) bf16 | w_ref: (Cout, K) bf16 | g/b: (Cout, 1) f32
    acc = jnp.dot(w_ref[...], xcol_ref[...],
                  preferred_element_type=jnp.float32)              # MXU, f32 acc
    # Training-mode BatchNorm over the real M columns (zero-padded columns
    # contribute exactly 0 to sum and sum-of-squares, so dividing by the real
    # M keeps the statistics exact).
    mean = jnp.sum(acc, axis=-1, keepdims=True) * inv_m
    var = jnp.maximum(jnp.sum(acc * acc, axis=-1, keepdims=True) * inv_m
                      - mean * mean, 0.0)
    scale = g_ref[...] * jax.lax.rsqrt(var + eps)
    y = (acc - mean) * scale + b_ref[...]
    out_ref[...] = jnp.maximum(y, 0.0).astype(out_ref.dtype)


def _fused_conv_bn_relu_add_kernel(xcol_ref, w_ref, g_ref, b_ref, res_ref,
                                   out_ref, sum_ref, *, eps, inv_m):
    # Same as above, plus a fused residual add producing a second output
    # (covers the "branchX1(x) + b(X-1)3" adds of IB.forward).
    acc = jnp.dot(w_ref[...], xcol_ref[...],
                  preferred_element_type=jnp.float32)
    mean = jnp.sum(acc, axis=-1, keepdims=True) * inv_m
    var = jnp.maximum(jnp.sum(acc * acc, axis=-1, keepdims=True) * inv_m
                      - mean * mean, 0.0)
    scale = g_ref[...] * jax.lax.rsqrt(var + eps)
    a = jnp.maximum((acc - mean) * scale + b_ref[...], 0.0)
    out_ref[...] = a.astype(out_ref.dtype)
    sum_ref[...] = (a + res_ref[...].astype(jnp.float32)).astype(sum_ref.dtype)


def _conv_partial_stats_kernel(xcol_ref, w_ref, out_ref, s_ref, ss_ref):
    # Tiled pass 1: per-M-tile GEMM + per-channel partial sum / sum-of-squares.
    acc = jnp.dot(w_ref[...], xcol_ref[...],
                  preferred_element_type=jnp.float32)              # (Cout, TM)
    out_ref[...] = acc
    s_ref[...] = jnp.sum(acc, axis=-1, keepdims=True)[None]        # (1, Cout, 1)
    ss_ref[...] = jnp.sum(acc * acc, axis=-1, keepdims=True)[None]  # (1, Cout, 1)


def _bn_relu_kernel(y_ref, scale_ref, shift_ref, out_ref):
    # Tiled pass 2: lane-dense normalize + ReLU.
    a = jnp.maximum(y_ref[...] * scale_ref[...] + shift_ref[...], 0.0)
    out_ref[...] = a.astype(out_ref.dtype)


def _bn_relu_add_kernel(y_ref, res_ref, scale_ref, shift_ref, out_ref, sum_ref):
    a = jnp.maximum(y_ref[...] * scale_ref[...] + shift_ref[...], 0.0)
    out_ref[...] = a.astype(out_ref.dtype)
    sum_ref[...] = (a + res_ref[...].astype(jnp.float32)).astype(sum_ref.dtype)


# ---------------------------------------------------------------------------
# pallas_call wrappers
# ---------------------------------------------------------------------------
def _fused_call(xcol, wcol, g2, b2, res2d, eps, inv_m):
    """Single fused block: conv GEMM + BN(batch stats) + ReLU (+ residual)."""
    K, Mp = xcol.shape
    Cout = wcol.shape[0]

    def full(shape):
        return pl.BlockSpec(shape, lambda i, _s=shape: (0,) * len(_s))

    if res2d is None:
        out2d = pl.pallas_call(
            functools.partial(_fused_conv_bn_relu_kernel, eps=eps, inv_m=inv_m),
            grid=(1,),
            in_specs=[full((K, Mp)), full((Cout, K)),
                      full((Cout, 1)), full((Cout, 1))],
            out_specs=full((Cout, Mp)),
            out_shape=jax.ShapeDtypeStruct((Cout, Mp), jnp.bfloat16),
            compiler_params=_PARAMS_SINGLE,
        )(xcol, wcol, g2, b2)
        return out2d, None

    out2d, sum2d = pl.pallas_call(
        functools.partial(_fused_conv_bn_relu_add_kernel, eps=eps, inv_m=inv_m),
        grid=(1,),
        in_specs=[full((K, Mp)), full((Cout, K)),
                  full((Cout, 1)), full((Cout, 1)), full((Cout, Mp))],
        out_specs=(full((Cout, Mp)), full((Cout, Mp))),
        out_shape=(jax.ShapeDtypeStruct((Cout, Mp), jnp.bfloat16),
                   jax.ShapeDtypeStruct((Cout, Mp), jnp.bfloat16)),
        compiler_params=_PARAMS_SINGLE,
    )(xcol, wcol, g2, b2, res2d)
    return out2d, sum2d


def _tiled_call(xcol, wcol, g2, b2, res2d, eps, inv_m):
    """Two-pass tiled pipeline for large M (double-buffered, 'parallel' grid)."""
    K, Mp = xcol.shape
    Cout = wcol.shape[0]
    tm = _TILE_M
    nt = Mp // tm

    # Pass 1: per-tile GEMM on the MXU + per-tile channel sum / sumsq.
    conv, s_part, ss_part = pl.pallas_call(
        _conv_partial_stats_kernel,
        grid=(nt,),
        in_specs=[
            pl.BlockSpec((K, tm), lambda i: (0, i)),
            pl.BlockSpec((Cout, K), lambda i: (0, 0)),
        ],
        out_specs=(
            pl.BlockSpec((Cout, tm), lambda i: (0, i)),
            pl.BlockSpec((1, Cout, 1), lambda i: (i, 0, 0)),
            pl.BlockSpec((1, Cout, 1), lambda i: (i, 0, 0)),
        ),
        out_shape=(
            jax.ShapeDtypeStruct((Cout, Mp), jnp.float32),
            jax.ShapeDtypeStruct((nt, Cout, 1), jnp.float32),
            jax.ShapeDtypeStruct((nt, Cout, 1), jnp.float32),
        ),
        compiler_params=_PARAMS_PARALLEL,
    )(xcol, wcol)

    # Tiny cross-tile reduction + BN coefficients in plain JAX (Cout scalars).
    mean = jnp.sum(s_part, axis=0) * inv_m                       # (Cout, 1)
    var = jnp.maximum(jnp.sum(ss_part, axis=0) * inv_m - mean * mean, 0.0)
    scale = g2 * jax.lax.rsqrt(var + eps)
    shift = b2 - mean * scale

    # Pass 2: lane-dense normalize + ReLU (+ fused residual add).
    if res2d is None:
        out2d = pl.pallas_call(
            _bn_relu_kernel,
            grid=(nt,),
            in_specs=[
                pl.BlockSpec((Cout, tm), lambda i: (0, i)),
                pl.BlockSpec((Cout, 1), lambda i: (0, 0)),
                pl.BlockSpec((Cout, 1), lambda i: (0, 0)),
            ],
            out_specs=pl.BlockSpec((Cout, tm), lambda i: (0, i)),
            out_shape=jax.ShapeDtypeStruct((Cout, Mp), jnp.bfloat16),
            compiler_params=_PARAMS_PARALLEL,
        )(conv, scale, shift)
        return out2d, None

    out2d, sum2d = pl.pallas_call(
        _bn_relu_add_kernel,
        grid=(nt,),
        in_specs=[
            pl.BlockSpec((Cout, tm), lambda i: (0, i)),
            pl.BlockSpec((Cout, tm), lambda i: (0, i)),
            pl.BlockSpec((Cout, 1), lambda i: (0, 0)),
            pl.BlockSpec((Cout, 1), lambda i: (0, 0)),
        ],
        out_specs=(
            pl.BlockSpec((Cout, tm), lambda i: (0, i)),
            pl.BlockSpec((Cout, tm), lambda i: (0, i)),
        ),
        out_shape=(
            jax.ShapeDtypeStruct((Cout, Mp), jnp.bfloat16),
            jax.ShapeDtypeStruct((Cout, Mp), jnp.bfloat16),
        ),
        compiler_params=_PARAMS_PARALLEL,
    )(conv, res2d, scale, shift)
    return out2d, sum2d


def conv3x3_bn_relu(x_chw, wcol, gamma, beta, dilation, *, residual=None, eps=_EPS):
    """Conv2d(3x3, stride=1, padding=dilation, dilation) + BN(batch) + ReLU.

    x_chw:    (Cin, N, H, W) bf16 activations (channels-first).
    wcol:     (Cout, 9*Cin) bf16 im2col weights (tap-major, channel-minor).
    gamma/beta: (Cout,) f32 BatchNorm affine parameters.
    residual: optional (Cout, N, H, W) bf16; if given, also returns
              relu(bn(conv(x))) + residual (fused into the kernel epilogue).
    """
    Cin, N, H, W = x_chw.shape
    Cout = wcol.shape[0]
    K = 9 * Cin
    M = N * H * W
    pad = dilation

    # --- im2col glue (plain JAX): 'same' padding for the dilated 3x3 conv.
    # K stays un-padded on purpose: these convs are memory-bound (tiny K/Cout),
    # so zero-padding K/Cout to MXU-friendly sizes would only add HBM traffic.
    xp = jnp.pad(x_chw, ((0, 0), (0, 0), (pad, pad), (pad, pad)))
    taps = []
    for ky in range(3):
        for kx in range(3):
            oy, ox = ky * dilation, kx * dilation
            taps.append(xp[:, :, oy:oy + H, ox:ox + W])
    xcol = jnp.concatenate(taps, axis=0).reshape(K, M)            # bf16 (K, M)

    # --- pick single-fused-block vs tiled two-pass pipeline (VMEM budget).
    fused_mp = _round_up(M, _LANE)
    fused_vmem = (2 * K * fused_mp * 2        # xcol tile (bf16, double-buffered)
                  + 4 * Cout * fused_mp * 2   # up to 2 bf16 outputs, dbl-buffered
                  + Cout * fused_mp * 4)      # live f32 accumulator
    use_fused = fused_vmem <= _FUSED_VMEM_BUDGET

    Mp = fused_mp if use_fused else _round_up(M, _TILE_M)
    if Mp != M:
        # Zero columns contribute nothing to sum/sumsq, so BN stats (which
        # divide by the true M) stay exact; padded outputs are cropped below.
        xcol = jnp.pad(xcol, ((0, 0), (0, Mp - M)))

    res2d = None
    if residual is not None:
        res2d = residual.reshape(Cout, M)
        if Mp != M:
            res2d = jnp.pad(res2d, ((0, 0), (0, Mp - M)))

    g2 = gamma.reshape(Cout, 1).astype(jnp.float32)
    b2 = beta.reshape(Cout, 1).astype(jnp.float32)
    inv_m = 1.0 / float(M)

    if use_fused:
        out2d, sum2d = _fused_call(xcol, wcol, g2, b2, res2d, eps, inv_m)
    else:
        out2d, sum2d = _tiled_call(xcol, wcol, g2, b2, res2d, eps, inv_m)

    out = out2d[:, :M].reshape(Cout, N, H, W)
    if residual is None:
        return out
    return out, sum2d[:, :M].reshape(Cout, N, H, W)


# ---------------------------------------------------------------------------
# Parameter init (deterministic; mirrors shapes of IB.__init__)
# ---------------------------------------------------------------------------
def init_block(key, cin, cout):
    kw, kg, kb = jax.random.split(key, 3)
    bound = 1.0 / math.sqrt(cin * 9)
    w = jax.random.uniform(kw, (cout, cin, 3, 3), jnp.float32, -bound, bound)  # OIHW
    # im2col weight layout: tap-major / channel-minor, matching the glue above;
    # stored in bf16 (MXU operand dtype).  f32 accumulation happens in-kernel.
    wcol = jnp.transpose(w, (0, 2, 3, 1)).reshape(cout, 9 * cin).astype(jnp.bfloat16)
    gamma = 1.0 + 0.1 * jax.random.normal(kg, (cout,), jnp.float32)
    beta = 0.1 * jax.random.normal(kb, (cout,), jnp.float32)
    # The Conv2d bias is dropped on purpose: under training-mode BatchNorm it
    # is exactly cancelled by the mean subtraction.
    return (wcol, gamma, beta)


def init_ib_params(key, in_channels):
    mid = in_channels // 4
    spec = []
    for br in (1, 2, 3, 4):
        spec += [(f"b{br}1", in_channels, mid),
                 (f"b{br}2", mid, mid),
                 (f"b{br}3", mid, mid)]
    spec.append(("fusion", in_channels, in_channels))
    keys = jax.random.split(key, len(spec))
    return {name: init_block(k, cin, cout)
            for k, (name, cin, cout) in zip(keys, spec)}


# ---------------------------------------------------------------------------
# IB forward
# ---------------------------------------------------------------------------
def ib_forward(x_nchw, params):
    N, C, H, W = x_nchw.shape
    mid = C // 4
    # NCHW -> channels-first (C, N, H, W) bf16: keeps M = N*H*W on the lane axis.
    x = jnp.transpose(x_nchw, (1, 0, 2, 3)).astype(jnp.bfloat16)

    # Fuse the four dilation=1 branch-head convs into ONE GEMM (shared input/K,
    # per-channel BN stats are unaffected by the channel concatenation).
    heads_names = ("b11", "b21", "b31", "b41")
    wh = jnp.concatenate([params[n][0] for n in heads_names], axis=0)
    gh = jnp.concatenate([params[n][1] for n in heads_names], axis=0)
    bh = jnp.concatenate([params[n][2] for n in heads_names], axis=0)
    heads = conv3x3_bn_relu(x, wh, gh, bh, dilation=1)            # (C, N, H, W)
    h1, h2, h3, h4 = (heads[i * mid:(i + 1) * mid] for i in range(4))

    b12 = conv3x3_bn_relu(h1, *params["b12"], dilation=2)
    b13, b21 = conv3x3_bn_relu(b12, *params["b13"], dilation=4, residual=h2)
    b22 = conv3x3_bn_relu(b21, *params["b22"], dilation=2)
    b23, b31 = conv3x3_bn_relu(b22, *params["b23"], dilation=4, residual=h3)
    b32 = conv3x3_bn_relu(b31, *params["b32"], dilation=2)
    b33, b41 = conv3x3_bn_relu(b32, *params["b33"], dilation=4, residual=h4)
    b42 = conv3x3_bn_relu(b41, *params["b42"], dilation=2)
    b43 = conv3x3_bn_relu(b42, *params["b43"], dilation=4)

    # Channel concat (torch.cat(..., dim=1)) is a cheap leading-axis concat in
    # this layout; left to XLA.
    cat = jnp.concatenate([b13, b23, b33, b43], axis=0)           # (C, N, H, W)
    y = conv3x3_bn_relu(cat, *params["fusion"], dilation=1)

    # Back to NCHW, f32 (PyTorch convention).
    return jnp.transpose(y, (1, 0, 2, 3)).astype(jnp.float32)


# ---------------------------------------------------------------------------
if __name__ == "__main__":
    key = jax.random.PRNGKey(0)
    k_x, k_p = jax.random.split(key)

    batch, in_channels, H, W = 2, 16, 16, 16          # mid_channels = 4
    x = jax.random.normal(k_x, (batch, in_channels, H, W), jnp.float32)  # NCHW
    params = init_ib_params(k_p, in_channels)

    fwd = jax.jit(ib_forward)
    y = fwd(x, params)
    jax.block_until_ready(y)

    assert y.shape == (batch, in_channels, H, W), y.shape
    assert bool(jnp.all(jnp.isfinite(y)))
    print("KERNEL_OK")
</pallas_src>

<mosaic_0001>
module attributes {stable_mosaic.version = 11 : i64} {
  func.func @_fused_conv_bn_relu_kernel(%arg0: i32, %arg1: memref<144x512xbf16, #tpu.memory_space<vmem>>, %arg2: memref<16x144xbf16, #tpu.memory_space<vmem>>, %arg3: memref<16x1xf32, #tpu.memory_space<vmem>>, %arg4: memref<16x1xf32, #tpu.memory_space<vmem>>, %arg5: memref<16x512xbf16, #tpu.memory_space<vmem>>) attributes {dimension_semantics = [#tpu.dimension_semantics<arbitrary>], iteration_bounds = array<i64: 1>, scalar_prefetch = 0 : i64, scratch_operands = 0 : i64, tpu.core_type = #tpu.core_type<tc>, window_params = [{pipeline_mode = #tpu.pipeline_mode<synchronous>, transform_indices = @transform_0, window_bounds = array<i64: 144, 512>}, {pipeline_mode = #tpu.pipeline_mode<synchronous>, transform_indices = @transform_1, window_bounds = array<i64: 16, 144>}, {pipeline_mode = #tpu.pipeline_mode<synchronous>, transform_indices = @transform_2, window_bounds = array<i64: 16, 1>}, {pipeline_mode = #tpu.pipeline_mode<synchronous>, transform_indices = @transform_3, window_bounds = array<i64: 16, 1>}, {pipeline_mode = #tpu.pipeline_mode<synchronous>, transform_indices = @transform_4, window_bounds = array<i64: 16, 512>}]} {
    %c0 = arith.constant 0 : index
    %c0_0 = arith.constant 0 : index
    %0 = vector.load %arg2[%c0, %c0_0] : memref<16x144xbf16, #tpu.memory_space<vmem>>, vector<16x144xbf16>
    %c0_1 = arith.constant 0 : index
    %c0_2 = arith.constant 0 : index
    %1 = vector.load %arg1[%c0_1, %c0_2] : memref<144x512xbf16, #tpu.memory_space<vmem>>, vector<144x512xbf16>
    %cst = arith.constant dense<0.000000e+00> : vector<16x512xf32>
    %2 = tpu.matmul %0, %1, %cst {dimension_numbers = #tpu.dot_dimension_numbers<[1], [0], [0], [1], [0, 0, 1, 1], [], []>} : vector<16x144xbf16>, vector<144x512xbf16>, vector<16x512xf32> -> vector<16x512xf32>
    %cst_3 = arith.constant dense<0.000000e+00> : vector<16xf32>
    %3 = vector.multi_reduction <add>, %2, %cst_3 [1] : vector<16x512xf32> to vector<16xf32>
    %4 = vector.shape_cast %3 : vector<16xf32> to vector<16x1xf32>
    %cst_4 = arith.constant 0.001953125 : f32
    %5 = vector.broadcast %cst_4 : f32 to vector<16x1xf32>
    %6 = arith.mulf %4, %5 : vector<16x1xf32>
    %7 = arith.mulf %2, %2 : vector<16x512xf32>
    %cst_5 = arith.constant dense<0.000000e+00> : vector<16xf32>
    %8 = vector.multi_reduction <add>, %7, %cst_5 [1] : vector<16x512xf32> to vector<16xf32>
    %9 = vector.shape_cast %8 : vector<16xf32> to vector<16x1xf32>
    %cst_6 = arith.constant 0.001953125 : f32
    %10 = vector.broadcast %cst_6 : f32 to vector<16x1xf32>
    %11 = arith.mulf %9, %10 : vector<16x1xf32>
    %12 = arith.mulf %6, %6 : vector<16x1xf32>
    %13 = arith.subf %11, %12 : vector<16x1xf32>
    %cst_7 = arith.constant 0.000000e+00 : f32
    %14 = vector.broadcast %cst_7 : f32 to vector<16x1xf32>
    %15 = arith.maximumf %13, %14 : vector<16x1xf32>
    %c0_8 = arith.constant 0 : index
    %c0_9 = arith.constant 0 : index
    %16 = vector.load %arg3[%c0_8, %c0_9] : memref<16x1xf32, #tpu.memory_space<vmem>>, vector<16x1xf32>
    %cst_10 = arith.constant 9.99999974E-6 : f32
    %17 = vector.broadcast %cst_10 : f32 to vector<16x1xf32>
    %18 = arith.addf %15, %17 : vector<16x1xf32>
    %19 = math.rsqrt %18 : vector<16x1xf32>
    %20 = arith.mulf %16, %19 : vector<16x1xf32>
    %21 = vector.broadcast %6 : vector<16x1xf32> to vector<16x512xf32>
    %22 = arith.subf %2, %21 : vector<16x512xf32>
    %23 = vector.broadcast %20 : vector<16x1xf32> to vector<16x512xf32>
    %24 = arith.mulf %22, %23 : vector<16x512xf32>
    %c0_11 = arith.constant 0 : index
    %c0_12 = arith.constant 0 : index
    %25 = vector.load %arg4[%c0_11, %c0_12] : memref<16x1xf32, #tpu.memory_space<vmem>>, vector<16x1xf32>
    %26 = vector.broadcast %25 : vector<16x1xf32> to vector<16x512xf32>
    %27 = arith.addf %24, %26 : vector<16x512xf32>
    %cst_13 = arith.constant 0.000000e+00 : f32
    %28 = vector.broadcast %cst_13 : f32 to vector<16x512xf32>
    %29 = arith.maximumf %27, %28 : vector<16x512xf32>
    %30 = arith.truncf %29 : vector<16x512xf32> to vector<16x512xbf16>
    %c0_14 = arith.constant 0 : index
    %c0_15 = arith.constant 0 : index
    %31 = vector.load %arg5[%c0_14, %c0_15] : memref<16x512xbf16, #tpu.memory_space<vmem>>, vector<16x512xbf16>
    tpu.vector_store %arg5[%c0_14, %c0_15], %30 {strides = array<i32>} : memref<16x512xbf16, #tpu.memory_space<vmem>>, vector<16x512xbf16>,
    return
  }
  func.func @transform_0(%arg0: i32) -> (i32, i32) {
    %c0_i32 = arith.constant 0 : i32
    %c0_i32_0 = arith.constant 0 : i32
    %c0_i32_1 = arith.constant 0 : i32
    return %c0_i32, %c0_i32_0 : i32, i32
  }
  func.func @transform_1(%arg0: i32) -> (i32, i32) {
    %c0_i32 = arith.constant 0 : i32
    %c0_i32_0 = arith.constant 0 : i32
    %c0_i32_1 = arith.constant 0 : i32
    return %c0_i32, %c0_i32_0 : i32, i32
  }
  func.func @transform_2(%arg0: i32) -> (i32, i32) {
    %c0_i32 = arith.constant 0 : i32
    %c0_i32_0 = arith.constant 0 : i32
    %c0_i32_1 = arith.constant 0 : i32
    return %c0_i32, %c0_i32_0 : i32, i32
  }
  func.func @transform_3(%arg0: i32) -> (i32, i32) {
    %c0_i32 = arith.constant 0 : i32
    %c0_i32_0 = arith.constant 0 : i32
    %c0_i32_1 = arith.constant 0 : i32
    return %c0_i32, %c0_i32_0 : i32, i32
  }
  func.func @transform_4(%arg0: i32) -> (i32, i32) {
    %c0_i32 = arith.constant 0 : i32
    %c0_i32_0 = arith.constant 0 : i32
    %c0_i32_1 = arith.constant 0 : i32
    return %c0_i32, %c0_i32_0 : i32, i32
  }
}

module attributes {stable_mosaic.version = 11 : i64} {
  func.func @_fused_conv_bn_relu_kernel(%arg0: i32, %arg1: memref<36x512xbf16, #tpu.memory_space<vmem>>, %arg2: memref<4x36xbf16, #tpu.memory_space<vmem>>, %arg3: memref<4x1xf32, #tpu.memory_space<vmem>>, %arg4: memref<4x1xf32, #tpu.memory_space<vmem>>, %arg5: memref<4x512xbf16, #tpu.memory_space<vmem>>) attributes {dimension_semantics = [#tpu.dimension_semantics<arbitrary>], iteration_bounds = array<i64: 1>, scalar_prefetch = 0 : i64, scratch_operands = 0 : i64, tpu.core_type = #tpu.core_type<tc>, window_params = [{pipeline_mode = #tpu.pipeline_mode<synchronous>, transform_indices = @transform_0, window_bounds = array<i64: 36, 512>}, {pipeline_mode = #tpu.pipeline_mode<synchronous>, transform_indices = @transform_1, window_bounds = array<i64: 4, 36>}, {pipeline_mode = #tpu.pipeline_mode<synchronous>, transform_indices = @transform_2, window_bounds = array<i64: 4, 1>}, {pipeline_mode = #tpu.pipeline_mode<synchronous>, transform_indices = @transform_3, window_bounds = array<i64: 4, 1>}, {pipeline_mode = #tpu.pipeline_mode<synchronous>, transform_indices = @transform_4, window_bounds = array<i64: 4, 512>}]} {
    %c0 = arith.constant 0 : index
    %c0_0 = arith.constant 0 : index
    %0 = vector.load %arg2[%c0, %c0_0] : memref<4x36xbf16, #tpu.memory_space<vmem>>, vector<4x36xbf16>
    %c0_1 = arith.constant 0 : index
    %c0_2 = arith.constant 0 : index
    %1 = vector.load %arg1[%c0_1, %c0_2] : memref<36x512xbf16, #tpu.memory_space<vmem>>, vector<36x512xbf16>
    %cst = arith.constant dense<0.000000e+00> : vector<4x512xf32>
    %2 = tpu.matmul %0, %1, %cst {dimension_numbers = #tpu.dot_dimension_numbers<[1], [0], [0], [1], [0, 0, 1, 1], [], []>} : vector<4x36xbf16>, vector<36x512xbf16>, vector<4x512xf32> -> vector<4x512xf32>
    %cst_3 = arith.constant dense<0.000000e+00> : vector<4xf32>
    %3 = vector.multi_reduction <add>, %2, %cst_3 [1] : vector<4x512xf32> to vector<4xf32>
    %4 = vector.shape_cast %3 : vector<4xf32> to vector<4x1xf32>
    %cst_4 = arith.constant 0.001953125 : f32
    %5 = vector.broadcast %cst_4 : f32 to vector<4x1xf32>
    %6 = arith.mulf %4, %5 : vector<4x1xf32>
    %7 = arith.mulf %2, %2 : vector<4x512xf32>
    %cst_5 = arith.constant dense<0.000000e+00> : vector<4xf32>
    %8 = vector.multi_reduction <add>, %7, %cst_5 [1] : vector<4x512xf32> to vector<4xf32>
    %9 = vector.shape_cast %8 : vector<4xf32> to vector<4x1xf32>
    %cst_6 = arith.constant 0.001953125 : f32
    %10 = vector.broadcast %cst_6 : f32 to vector<4x1xf32>
    %11 = arith.mulf %9, %10 : vector<4x1xf32>
    %12 = arith.mulf %6, %6 : vector<4x1xf32>
    %13 = arith.subf %11, %12 : vector<4x1xf32>
    %cst_7 = arith.constant 0.000000e+00 : f32
    %14 = vector.broadcast %cst_7 : f32 to vector<4x1xf32>
    %15 = arith.maximumf %13, %14 : vector<4x1xf32>
    %c0_8 = arith.constant 0 : index
    %c0_9 = arith.constant 0 : index
    %16 = vector.load %arg3[%c0_8, %c0_9] : memref<4x1xf32, #tpu.memory_space<vmem>>, vector<4x1xf32>
    %cst_10 = arith.constant 9.99999974E-6 : f32
    %17 = vector.broadcast %cst_10 : f32 to vector<4x1xf32>
    %18 = arith.addf %15, %17 : vector<4x1xf32>
    %19 = math.rsqrt %18 : vector<4x1xf32>
    %20 = arith.mulf %16, %19 : vector<4x1xf32>
    %21 = vector.broadcast %6 : vector<4x1xf32> to vector<4x512xf32>
    %22 = arith.subf %2, %21 : vector<4x512xf32>
    %23 = vector.broadcast %20 : vector<4x1xf32> to vector<4x512xf32>
    %24 = arith.mulf %22, %23 : vector<4x512xf32>
    %c0_11 = arith.constant 0 : index
    %c0_12 = arith.constant 0 : index
    %25 = vector.load %arg4[%c0_11, %c0_12] : memref<4x1xf32, #tpu.memory_space<vmem>>, vector<4x1xf32>
    %26 = vector.broadcast %25 : vector<4x1xf32> to vector<4x512xf32>
    %27 = arith.addf %24, %26 : vector<4x512xf32>
    %cst_13 = arith.constant 0.000000e+00 : f32
    %28 = vector.broadcast %cst_13 : f32 to vector<4x512xf32>
    %29 = arith.maximumf %27, %28 : vector<4x512xf32>
    %30 = arith.truncf %29 : vector<4x512xf32> to vector<4x512xbf16>
    %c0_14 = arith.constant 0 : index
    %c0_15 = arith.constant 0 : index
    %31 = vector.load %arg5[%c0_14, %c0_15] : memref<4x512xbf16, #tpu.memory_space<vmem>>, vector<4x512xbf16>
    tpu.vector_store %arg5[%c0_14, %c0_15], %30 {strides = array<i32>} : memref<4x512xbf16, #tpu.memory_space<vmem>>, vector<4x512xbf16>,
    return
  }
  func.func @transform_0(%arg0: i32) -> (i32, i32) {
    %c0_i32 = arith.constant 0 : i32
    %c0_i32_0 = arith.constant 0 : i32
    %c0_i32_1 = arith.constant 0 : i32
    return %c0_i32, %c0_i32_0 : i32, i32
  }
  func.func @transform_1(%arg0: i32) -> (i32, i32) {
    %c0_i32 = arith.constant 0 : i32
    %c0_i32_0 = arith.constant 0 : i32
    %c0_i32_1 = arith.constant 0 : i32
    return %c0_i32, %c0_i32_0 : i32, i32
  }
  func.func @transform_2(%arg0: i32) -> (i32, i32) {
    %c0_i32 = arith.constant 0 : i32
    %c0_i32_0 = arith.constant 0 : i32
    %c0_i32_1 = arith.constant 0 : i32
    return %c0_i32, %c0_i32_0 : i32, i32
  }
  func.func @transform_3(%arg0: i32) -> (i32, i32) {
    %c0_i32 = arith.constant 0 : i32
    %c0_i32_0 = arith.constant 0 : i32
    %c0_i32_1 = arith.constant 0 : i32
    return %c0_i32, %c0_i32_0 : i32, i32
  }
  func.func @transform_4(%arg0: i32) -> (i32, i32) {
    %c0_i32 = arith.constant 0 : i32
    %c0_i32_0 = arith.constant 0 : i32
    %c0_i32_1 = arith.constant 0 : i32
    return %c0_i32, %c0_i32_0 : i32, i32
  }
}

module attributes {stable_mosaic.version = 11 : i64} {
  func.func @_fused_conv_bn_relu_add_kernel(%arg0: i32, %arg1: memref<36x512xbf16, #tpu.memory_space<vmem>>, %arg2: memref<4x36xbf16, #tpu.memory_space<vmem>>, %arg3: memref<4x1xf32, #tpu.memory_space<vmem>>, %arg4: memref<4x1xf32, #tpu.memory_space<vmem>>, %arg5: memref<4x512xbf16, #tpu.memory_space<vmem>>, %arg6: memref<4x512xbf16, #tpu.memory_space<vmem>>, %arg7: memref<4x512xbf16, #tpu.memory_space<vmem>>) attributes {dimension_semantics = [#tpu.dimension_semantics<arbitrary>], iteration_bounds = array<i64: 1>, scalar_prefetch = 0 : i64, scratch_operands = 0 : i64, tpu.core_type = #tpu.core_type<tc>, window_params = [{pipeline_mode = #tpu.pipeline_mode<synchronous>, transform_indices = @transform_0, window_bounds = array<i64: 36, 512>}, {pipeline_mode = #tpu.pipeline_mode<synchronous>, transform_indices = @transform_1, window_bounds = array<i64: 4, 36>}, {pipeline_mode = #tpu.pipeline_mode<synchronous>, transform_indices = @transform_2, window_bounds = array<i64: 4, 1>}, {pipeline_mode = #tpu.pipeline_mode<synchronous>, transform_indices = @transform_3, window_bounds = array<i64: 4, 1>}, {pipeline_mode = #tpu.pipeline_mode<synchronous>, transform_indices = @transform_4, window_bounds = array<i64: 4, 512>}, {pipeline_mode = #tpu.pipeline_mode<synchronous>, transform_indices = @transform_5, window_bounds = array<i64: 4, 512>}, {pipeline_mode = #tpu.pipeline_mode<synchronous>, transform_indices = @transform_6, window_bounds = array<i64: 4, 512>}]} {
    %c0 = arith.constant 0 : index
    %c0_0 = arith.constant 0 : index
    %0 = vector.load %arg2[%c0, %c0_0] : memref<4x36xbf16, #tpu.memory_space<vmem>>, vector<4x36xbf16>
    %c0_1 = arith.constant 0 : index
    %c0_2 = arith.constant 0 : index
    %1 = vector.load %arg1[%c0_1, %c0_2] : memref<36x512xbf16, #tpu.memory_space<vmem>>, vector<36x512xbf16>
    %cst = arith.constant dense<0.000000e+00> : vector<4x512xf32>
    %2 = tpu.matmul %0, %1, %cst {dimension_numbers = #tpu.dot_dimension_numbers<[1], [0], [0], [1], [0, 0, 1, 1], [], []>} : vector<4x36xbf16>, vector<36x512xbf16>, vector<4x512xf32> -> vector<4x512xf32>
    %cst_3 = arith.constant dense<0.000000e+00> : vector<4xf32>
    %3 = vector.multi_reduction <add>, %2, %cst_3 [1] : vector<4x512xf32> to vector<4xf32>
    %4 = vector.shape_cast %3 : vector<4xf32> to vector<4x1xf32>
    %cst_4 = arith.constant 0.001953125 : f32
    %5 = vector.broadcast %cst_4 : f32 to vector<4x1xf32>
    %6 = arith.mulf %4, %5 : vector<4x1xf32>
    %7 = arith.mulf %2, %2 : vector<4x512xf32>
    %cst_5 = arith.constant dense<0.000000e+00> : vector<4xf32>
    %8 = vector.multi_reduction <add>, %7, %cst_5 [1] : vector<4x512xf32> to vector<4xf32>
    %9 = vector.shape_cast %8 : vector<4xf32> to vector<4x1xf32>
    %cst_6 = arith.constant 0.001953125 : f32
    %10 = vector.broadcast %cst_6 : f32 to vector<4x1xf32>
    %11 = arith.mulf %9, %10 : vector<4x1xf32>
    %12 = arith.mulf %6, %6 : vector<4x1xf32>
    %13 = arith.subf %11, %12 : vector<4x1xf32>
    %cst_7 = arith.constant 0.000000e+00 : f32
    %14 = vector.broadcast %cst_7 : f32 to vector<4x1xf32>
    %15 = arith.maximumf %13, %14 : vector<4x1xf32>
    %c0_8 = arith.constant 0 : index
    %c0_9 = arith.constant 0 : index
    %16 = vector.load %arg3[%c0_8, %c0_9] : memref<4x1xf32, #tpu.memory_space<vmem>>, vector<4x1xf32>
    %cst_10 = arith.constant 9.99999974E-6 : f32
    %17 = vector.broadcast %cst_10 : f32 to vector<4x1xf32>
    %18 = arith.addf %15, %17 : vector<4x1xf32>
    %19 = math.rsqrt %18 : vector<4x1xf32>
    %20 = arith.mulf %16, %19 : vector<4x1xf32>
    %21 = vector.broadcast %6 : vector<4x1xf32> to vector<4x512xf32>
    %22 = arith.subf %2, %21 : vector<4x512xf32>
    %23 = vector.broadcast %20 : vector<4x1xf32> to vector<4x512xf32>
    %24 = arith.mulf %22, %23 : vector<4x512xf32>
    %c0_11 = arith.constant 0 : index
    %c0_12 = arith.constant 0 : index
    %25 = vector.load %arg4[%c0_11, %c0_12] : memref<4x1xf32, #tpu.memory_space<vmem>>, vector<4x1xf32>
    %26 = vector.broadcast %25 : vector<4x1xf32> to vector<4x512xf32>
    %27 = arith.addf %24, %26 : vector<4x512xf32>
    %cst_13 = arith.constant 0.000000e+00 : f32
    %28 = vector.broadcast %cst_13 : f32 to vector<4x512xf32>
    %29 = arith.maximumf %27, %28 : vector<4x512xf32>
    %30 = arith.truncf %29 : vector<4x512xf32> to vector<4x512xbf16>
    %c0_14 = arith.constant 0 : index
    %c0_15 = arith.constant 0 : index
    %31 = vector.load %arg6[%c0_14, %c0_15] : memref<4x512xbf16, #tpu.memory_space<vmem>>, vector<4x512xbf16>
    tpu.vector_store %arg6[%c0_14, %c0_15], %30 {strides = array<i32>} : memref<4x512xbf16, #tpu.memory_space<vmem>>, vector<4x512xbf16>,
    %c0_16 = arith.constant 0 : index
    %c0_17 = arith.constant 0 : index
    %32 = vector.load %arg5[%c0_16, %c0_17] : memref<4x512xbf16, #tpu.memory_space<vmem>>, vector<4x512xbf16>
    %33 = arith.extf %32 : vector<4x512xbf16> to vector<4x512xf32>
    %34 = arith.addf %29, %33 : vector<4x512xf32>
    %35 = arith.truncf %34 : vector<4x512xf32> to vector<4x512xbf16>
    %c0_18 = arith.constant 0 : index
    %c0_19 = arith.constant 0 : index
    %36 = vector.load %arg7[%c0_18, %c0_19] : memref<4x512xbf16, #tpu.memory_space<vmem>>, vector<4x512xbf16>
    tpu.vector_store %arg7[%c0_18, %c0_19], %35 {strides = array<i32>} : memref<4x512xbf16, #tpu.memory_space<vmem>>, vector<4x512xbf16>,
    return
  }
  func.func @transform_0(%arg0: i32) -> (i32, i32) {
    %c0_i32 = arith.constant 0 : i32
    %c0_i32_0 = arith.constant 0 : i32
    %c0_i32_1 = arith.constant 0 : i32
    return %c0_i32, %c0_i32_0 : i32, i32
  }
  func.func @transform_1(%arg0: i32) -> (i32, i32) {
    %c0_i32 = arith.constant 0 : i32
    %c0_i32_0 = arith.constant 0 : i32
    %c0_i32_1 = arith.constant 0 : i32
    return %c0_i32, %c0_i32_0 : i32, i32
  }
  func.func @transform_2(%arg0: i32) -> (i32, i32) {
    %c0_i32 = arith.constant 0 : i32
    %c0_i32_0 = arith.constant 0 : i32
    %c0_i32_1 = arith.constant 0 : i32
    return %c0_i32, %c0_i32_0 : i32, i32
  }
  func.func @transform_3(%arg0: i32) -> (i32, i32) {
    %c0_i32 = arith.constant 0 : i32
    %c0_i32_0 = arith.constant 0 : i32
    %c0_i32_1 = arith.constant 0 : i32
    return %c0_i32, %c0_i32_0 : i32, i32
  }
  func.func @transform_4(%arg0: i32) -> (i32, i32) {
    %c0_i32 = arith.constant 0 : i32
    %c0_i32_0 = arith.constant 0 : i32
    %c0_i32_1 = arith.constant 0 : i32
    return %c0_i32, %c0_i32_0 : i32, i32
  }
  func.func @transform_5(%arg0: i32) -> (i32, i32) {
    %c0_i32 = arith.constant 0 : i32
    %c0_i32_0 = arith.constant 0 : i32
    %c0_i32_1 = arith.constant 0 : i32
    return %c0_i32, %c0_i32_0 : i32, i32
  }
  func.func @transform_6(%arg0: i32) -> (i32, i32) {
    %c0_i32 = arith.constant 0 : i32
    %c0_i32_0 = arith.constant 0 : i32
    %c0_i32_1 = arith.constant 0 : i32
    return %c0_i32, %c0_i32_0 : i32, i32
  }
}

</mosaic_0001>

<bundles_post_ra>
// kernel: ib_forward.10
= control target key start
LH: loop header
LB: loop body
LE: loop exit
PB: predicated region body
PF: predicated region fallthrough
CT: control target
= control target key end

     0   :  { %vm245_vm0 = vcmask 130048   ;;  %s791_s0 = inlined_call_operand.vmem [shape: bf16[144,512], index: 0, kind: input, shape index: {}]   ;;  %s792_s1 = inlined_call_operand.vmem [shape: bf16[16,144], index: 1, kind: input, shape index: {}]   ;;  %s793_s3 = inlined_call_operand.vmem [shape: f32[16,1], index: 3, kind: input, shape index: {}]   ;;  %s794_s2 = inlined_call_operand.vmem [shape: f32[16,1], index: 2, kind: input, shape index: {}]   ;;  %s795_s4 = inlined_call_operand.vmem [shape: bf16[16,512], index: 4, kind: output, shape index: {}]  }
   0x1   :  { %v518_v0 = vld [vmem:[%s791_s0 + $0x4] ss:$16 sps:$4 sm:$0xff]   ;;  %v520_v1 = vld [vmem:[%s791_s0 + $0xc] ss:$16 sps:$4 sm:$0xff]   ;;  %v522_v2 = vld [vmem:[%s791_s0] ss:$16 sps:$4 sm:$0xff]  }
   0x2   :  { %249 = vmatprep.subr.bf16.mxu0 %v518_v0  ;;  %v523_v3 = vld [vmem:[%s791_s0 + $0x8] ss:$16 sps:$4 sm:$0xff]   ;;  %292 = vmatprep.subr.bf16.mxu1 %v520_v1  ;;  %v524_v4 = vld [vmem:[%s791_s0 + $0x24] ss:$16 sps:$4 sm:$0xff]   ;;  %v526_v5 = vld [vmem:[%s791_s0 + $0x2c] ss:$16 sps:$4 sm:$0xff]  }
   0x3   :  { %250 = vmatpush1.bf16.msra.mxu0 %v522_v2  ;;  %293 = vmatpush1.bf16.msra.mxu1 %v523_v3  ;;  %v528_v6 = vld [vmem:[%s791_s0 + $0x20] ss:$16 sps:$4 sm:$0xff]   ;;  %v529_v7 = vld [vmem:[%s791_s0 + $0x28] ss:$16 sps:$4 sm:$0xff]   ;;  %v530_v8 = vld [vmem:[%s791_s0 + $0x44] ss:$16 sps:$4 sm:$0xff]  }
   0x4   :  { %251 = vmatprep.subr.bf16.mxu0 %v524_v4  ;;  %294 = vmatprep.subr.bf16.mxu1 %v526_v5  ;;  %v532_v9 = vld [vmem:[%s791_s0 + $0x4c] ss:$16 sps:$4 sm:$0xff]   ;;  %v534_v10 = vld [vmem:[%s791_s0 + $0x40] ss:$16 sps:$4 sm:$0xff]   ;;  %v535_v11 = vld [vmem:[%s791_s0 + $0x48] ss:$16 sps:$4 sm:$0xff]  }
   0x5   :  { %v536_v12 = vld [vmem:[%s791_s0 + $0x64] ss:$16 sps:$4 sm:$0xff]   ;;  %v538_v13 = vld [vmem:[%s791_s0 + $0x6c] ss:$16 sps:$4 sm:$0xff]   ;;  %v540_v14 = vld [vmem:[%s791_s0 + $0x60] ss:$16 sps:$4 sm:$0xff]  }
   0x6   :  { %v541_v15 = vld [vmem:[%s791_s0 + $0x68] ss:$16 sps:$4 sm:$0xff]   ;;  %v542_v16 = vld [vmem:[%s791_s0 + $0x84] ss:$16 sps:$4 sm:$0xff]   ;;  %v544_v17 = vld [vmem:[%s791_s0 + $0x8c] ss:$16 sps:$4 sm:$0xff]  }
   0x7   :  { %252 = vmatpush1.bf16.msra.mxu0 %v528_v6  ;;  %295 = vmatpush1.bf16.msra.mxu1 %v529_v7  ;;  %v546_v18 = vld [vmem:[%s791_s0 + $0x80] ss:$16 sps:$4 sm:$0xff]   ;;  %v547_v19 = vld [vmem:[%s791_s0 + $0x88] ss:$16 sps:$4 sm:$0xff]   ;;  %v548_v20 = vld [vmem:[%s791_s0 + $0xa4] ss:$16 sps:$4 sm:$0xff]  }
   0x8   :  { %253 = vmatprep.subr.bf16.mxu0 %v530_v8  ;;  %296 = vmatprep.subr.bf16.mxu1 %v532_v9  ;;  %v550_v21 = vld [vmem:[%s791_s0 + $0xac] ss:$16 sps:$4 sm:$0xff]   ;;  %v552_v22 = vld [vmem:[%s791_s0 + $0xa0] ss:$16 sps:$4 sm:$0xff]   ;;  %v553_v23 = vld [vmem:[%s791_s0 + $0xa8] ss:$16 sps:$4 sm:$0xff]  }
   0x9   :  { %v554_v24 = vld [vmem:[%s791_s0 + $0xc4] ss:$16 sps:$4 sm:$0xff]   ;;  %v556_v25 = vld [vmem:[%s791_s0 + $0xcc] ss:$16 sps:$4 sm:$0xff]   ;;  %v558_v26 = vld [vmem:[%s791_s0 + $0xc0] ss:$16 sps:$4 sm:$0xff]  }
   0xa   :  { %v559_v27 = vld [vmem:[%s791_s0 + $0xc8] ss:$16 sps:$4 sm:$0xff]   ;;  %v560_v28 = vld [vmem:[%s791_s0 + $0xe4] ss:$16 sps:$4 sm:$0xff]   ;;  %v562_v29 = vld [vmem:[%s791_s0 + $0xec] ss:$16 sps:$4 sm:$0xff]  }
   0xb   :  { %254 = vmatpush1.bf16.msra.mxu0 %v534_v10  ;;  %297 = vmatpush1.bf16.msra.mxu1 %v535_v11  ;;  %v574_v30 = vld [vmem:[%s792_s1 + $0x4] ss:$8 sps:$4 sm:$0xff]   ;;  %v564_v31 = vld [vmem:[%s791_s0 + $0xe0] ss:$16 sps:$4 sm:$0xff]   ;;  %v565_v32 = vld [vmem:[%s791_s0 + $0xe8] ss:$16 sps:$4 sm:$0xff]  }
   0xc   :  { %255 = vmatprep.subr.bf16.mxu0 %v536_v12  ;;  %298 = vmatprep.subr.bf16.mxu1 %v538_v13  ;;  %v566_v33 = vld [vmem:[%s791_s0 + $0x104] ss:$16 sps:$4 sm:$0xff]   ;;  %v568_v34 = vld [vmem:[%s791_s0 + $0x10c] ss:$16 sps:$4 sm:$0xff]   ;;  %v570_v35 = vld [vmem:[%s791_s0 + $0x100] ss:$16 sps:$4 sm:$0xff]  }
   0xd   :  { %505 = vmatprep.mubr.msk.bf16.mxu0 %vm245_vm0, %v574_v30  ;;  %506 = vmatprep.mubr.msk.bf16.mxu1 %vm245_vm0, %v574_v30  ;;  %v571_v36 = vld [vmem:[%s791_s0 + $0x108] ss:$16 sps:$4 sm:$0xff]   ;;  %v579_v2 = vmov 0   ;;  %v407_v3 = vld [vmem:[%s793_s3] sm:$0xff] }
   0xe   :  { %v572_v37 = vld [vmem:[%s792_s1] ss:$8 sps:$4 sm:$0xff]   ;;  %517 = vset.pattern.permute.xlu1 %v579_v2  ;;  %516 = vset.pattern.permute.xlu0 %v579_v2 }
   0xf   :  { %256 = vmatpush1.bf16.msra.mxu0 %v540_v14  ;;  %299 = vmatpush1.bf16.msra.mxu1 %v541_v15 }
  0x10   :  { %257 = vmatprep.subr.bf16.mxu0 %v542_v16  ;;  %300 = vmatprep.subr.bf16.mxu1 %v544_v17 }
  0x13   :  { %258 = vmatpush1.bf16.msra.mxu0 %v546_v18  ;;  %301 = vmatpush1.bf16.msra.mxu1 %v547_v19 }
  0x14   :  { %259 = vmatprep.subr.bf16.mxu0 %v548_v20  ;;  %302 = vmatprep.subr.bf16.mxu1 %v550_v21 }
  0x17   :  { %260 = vmatpush1.bf16.msra.mxu0 %v552_v22  ;;  %303 = vmatpush1.bf16.msra.mxu1 %v553_v23 }
  0x18   :  { %261 = vmatprep.subr.bf16.mxu0 %v554_v24  ;;  %304 = vmatprep.subr.bf16.mxu1 %v556_v25 }
  0x1b   :  { %262 = vmatpush1.bf16.msra.mxu0 %v558_v26  ;;  %305 = vmatpush1.bf16.msra.mxu1 %v559_v27 }
  0x1c   :  { %263 = vmatprep.subr.bf16.mxu0 %v560_v28  ;;  %306 = vmatprep.subr.bf16.mxu1 %v562_v29  ;;  %v373_v28 = vld [vmem:[%s794_s2] sm:$0xff] }
  0x1f   :  { %264 = vmatpush1.bf16.msra.mxu0 %v564_v31  ;;  %307 = vmatpush1.bf16.msra.mxu1 %v565_v32  ;;  %v374_v31 = vld [vmem:[%s794_s2 + $0x8] sm:$0xff] }
  0x20   :  { %265 = vmatprep.subr.bf16.mxu0 %v566_v33  ;;  %308 = vmatprep.subr.bf16.mxu1 %v568_v34  ;;  %v408_v34 = vld [vmem:[%s793_s3 + $0x8] sm:$0xff] }
  0x23   :  { %266 = vmatpush1.bf16.msra.mxu0 %v570_v35  ;;  %309 = vmatpush1.bf16.msra.mxu1 %v571_v36 }
  0x26   :  { %282 = vmatmul.mubr.bf16.vlgmr.msra.gmra.mrb[0].mxu0 %v572_v37  ;;  %325 = vmatmul.mubr.bf16.vlgmr.msra.gmra.mrb[0].mxu1 %v572_v37 }
  0xf9   :  { %v719_v38 = vpop.f32.mrb[0].mxu0  ;;  %v721_v39 = vpop.f32.mrb[0].mxu1 }
  0xfa   :  { %v347_v40 = vmul.f32 %v719_v38, %v719_v38  ;;  %v725_v41 = vpop.f32.mrb[1].mxu0  ;;  %v727_v42 = vpop.f32.mrb[1].mxu1  ;;  %v349_v47 = vmul.f32 %v721_v39, %v721_v39 }
  0xfb   :  { %v335_v43 = vadd.f32 %v725_v41, %v719_v38  ;;  %v348_v44 = vmul.f32 %v725_v41, %v725_v41  ;;  %v733_v45 = vpop.f32.mrb[2].mxu0  ;;  %v735_v46 = vpop.f32.mrb[2].mxu1  ;;  %v350_v59 = vmul.f32 %v727_v42, %v727_v42 }
  0xfc   :  { %v351_v48 = vmul.f32 %v733_v45, %v733_v45  ;;  %v741_v49 = vpop.f32.mrb[3].mxu0  ;;  %v743_v50 = vpop.f32.mrb[3].mxu1  ;;  %v353_v55 = vmul.f32 %v735_v46, %v735_v46 }
  0xfd   :  { %v340_v51 = vadd.f32 %v741_v49, %v733_v45  ;;  %v352_v52 = vmul.f32 %v741_v49, %v741_v49  ;;  %v336_v53 = vadd.f32 %v335_v43, %v721_v39  ;;  %v355_v54 = vadd.f32 %v348_v44, %v347_v40 }
  0xfe   :  { %v354_v61 = vmul.f32 %v743_v50, %v743_v50 }
  0xff   :  { %v360_v56 = vadd.f32 %v352_v52, %v351_v48  ;;  %v337_v57 = vadd.f32 %v336_v53, %v727_v42  ;;  %v341_v58 = vadd.f32 %v340_v51, %v735_v46  ;;  %v356_v60 = vadd.f32 %v355_v54, %v349_v47 }
 0x101   :  { %338 = vadd.xlane.f32.xlu0 %v337_v57  ;;  %v342_v62 = vadd.f32 %v341_v58, %v743_v50  ;;  %v361_v63 = vadd.f32 %v360_v56, %v353_v55  ;;  %v357_v0 = vadd.f32 %v356_v60, %v350_v59 }
 0x103   :  { %v362_v1 = vadd.f32 %v361_v63, %v354_v61  ;;  %358 = vadd.xlane.f32.xlu1 %v357_v0 }
 0x105   :  { %343 = vadd.xlane.f32.xlu0 %v342_v62 }
 0x107   :  { %363 = vadd.xlane.f32.xlu1 %v362_v1 }
 0x118   :  { %411 = vperm.xlu1 %517, %v407_v3  }
 0x18e   :  { %v339_v4 = vpop.xlane.xlu0 %338 }
 0x18f   :  { %v345_v5 = vmul.f32 0.001953125, %v339_v4 }
 0x190   :  { %v359_v6 = vpop.xlane.xlu1 %358 }
 0x191   :  { %v367_v7 = vmul.f32 %v345_v5, %v345_v5  ;;  %v381_v8 = vsub.f32 %v719_v38, %v345_v5  ;;  %v382_v9 = vsub.f32 %v725_v41, %v345_v5  ;;  %v383_v10 = vsub.f32 %v721_v39, %v345_v5 }
 0x192   :  { %v365_v11 = vmul.f32 0.001953125, %v359_v6  ;;  %v344_v12 = vpop.xlane.xlu0 %343  ;;  %v384_v13 = vsub.f32 %v727_v42, %v345_v5 }
 0x193   :  { %v346_v14 = vmul.f32 0.001953125, %v344_v12 }
 0x194   :  { %v369_v15 = vsub.f32 %v365_v11, %v367_v7  ;;  %v364_v16 = vpop.xlane.xlu1 %363 }
 0x195   :  { %v368_v17 = vmul.f32 %v346_v14, %v346_v14  ;;  %v385_v18 = vsub.f32 %v733_v45, %v346_v14  ;;  %v386_v19 = vsub.f32 %v741_v49, %v346_v14  ;;  %v387_v20 = vsub.f32 %v735_v46, %v346_v14 }
 0x196   :  { %v371_v21 = vmax.f32 %v369_v15, 0.0  ;;  %v366_v22 = vmul.f32 0.001953125, %v364_v16  ;;  %v388_v23 = vsub.f32 %v743_v50, %v346_v14 }
 0x198   :  { %v375_v24 = vadd.f32 1e-05, %v371_v21  ;;  %v370_v25 = vsub.f32 %v366_v22, %v368_v17  ;;  %v412_v35 = vpop.permute.xlu1 %411 }
 0x19a   :  { %575 = vrsqrt.f32 %v375_v24  ;;  %v372_v26 = vmax.f32 %v370_v25, 0.0 }
 0x19c   :  { %v376_v27 = vadd.f32 1e-05, %v372_v26 }
 0x19e   :  { %577 = vrsqrt.f32 %v376_v27 }
 0x1a4   :  { %v576_v29 = vpop.eup %575 }
 0x1a5   :  { %v379_v30 = vmul.f32 %v576_v29, %v373_v28 }
 0x1a7   :  { %391 = vperm.xlu0 %516, %v379_v30  }
 0x1a8   :  { %v578_v32 = vpop.eup %577 }
 0x1a9   :  { %v380_v33 = vmul.f32 %v578_v32, %v374_v31 }
 0x1ab   :  { %396 = vperm.xlu1 %517, %v380_v33  }
 0x1af   :  { %416 = vperm.xlu1 %517, %v408_v34  }
 0x226   :  { %v392_v36 = vpop.permute.xlu0 %391 }
 0x227   :  { %v399_v37 = vmul.f32 %v392_v36, %v381_v8  ;;  %v400_v38 = vmul.f32 %v392_v36, %v382_v9  ;;  %v401_v39 = vmul.f32 %v392_v36, %v383_v10  ;;  %v402_v40 = vmul.f32 %v392_v36, %v384_v13 }
 0x229   :  { %v419_v41 = vadd.f32 %v412_v35, %v399_v37  ;;  %v420_v42 = vadd.f32 %v412_v35, %v400_v38  ;;  %v421_v43 = vadd.f32 %v412_v35, %v401_v39  ;;  %v422_v44 = vadd.f32 %v412_v35, %v402_v40 }
 0x22a   :  { %v397_v45 = vpop.permute.xlu1 %396 }
 0x22b   :  { %v427_v46 = vmax.f32 %v419_v41, 0.0  ;;  %v428_v47 = vmax.f32 %v420_v42, 0.0  ;;  %v429_v48 = vmax.f32 %v421_v43, 0.0  ;;  %v430_v49 = vmax.f32 %v422_v44, 0.0 }
 0x22c   :  { %v403_v50 = vmul.f32 %v397_v45, %v385_v18  ;;  %v404_v51 = vmul.f32 %v397_v45, %v386_v19  ;;  %v405_v54 = vmul.f32 %v397_v45, %v387_v20  ;;  %v406_v55 = vmul.f32 %v397_v45, %v388_v23 }
 0x22d   :  { %v511_v52 = vpack.c.bf16 %v428_v47, %v427_v46  ;;  %v512_v53 = vpack.c.bf16 %v430_v49, %v429_v48 }
 0x22e   :  { %v417_v56 = vpop.permute.xlu1 %416 }
 0x22f   :  { %459 = vst [vmem:[%s795_s4] sm:$0xff] %v511_v52  ;;  %460 = vst [vmem:[%s795_s4 + $0x8] sm:$0xff] %v512_v53  ;;  %v423_v57 = vadd.f32 %v417_v56, %v403_v50  ;;  %v424_v58 = vadd.f32 %v417_v56, %v404_v51  ;;  %v425_v59 = vadd.f32 %v417_v56, %v405_v54 }
 0x230   :  { %v426_v60 = vadd.f32 %v417_v56, %v406_v55 }
 0x231   :  { %v431_v61 = vmax.f32 %v423_v57, 0.0  ;;  %v432_v62 = vmax.f32 %v424_v58, 0.0  ;;  %v433_v63 = vmax.f32 %v425_v59, 0.0 }
 0x232   :  { %v434_v0 = vmax.f32 %v426_v60, 0.0 }
 0x233   :  { %v513_v1 = vpack.c.bf16 %v432_v62, %v431_v61 }
 0x234   :  { %v514_v2 = vpack.c.bf16 %v434_v0, %v433_v63 }
 0x235   :  { %461 = vst [vmem:[%s795_s4 + $0x10] sm:$0xff] %v513_v1 }
 0x236   :  { %462 = vst [vmem:[%s795_s4 + $0x18] sm:$0xff] %v514_v2 }

// kernel: ib_forward.11
= control target key start
LH: loop header
LB: loop body
LE: loop exit
PB: predicated region body
PF: predicated region fallthrough
CT: control target
= control target key end

     0   :  { %v308_v1 = vmov 0   ;;  %vm83_vm0 = vcmask 1041408   ;;  %vm79_vm1 = vcmask 293888   ;;  %vm178_vm2 = vcmask 1043456   ;;  %s385_s0 = inlined_call_operand.vmem [shape: bf16[36,512], index: 0, kind: input, shape index: {}]   ;;  %s386_s1 = inlined_call_operand.vmem [shape: bf16[4,36], index: 1, kind: input, shape index: {}]   ;;  %s387_s2 = inlined_call_operand.vmem [shape: f32[4,1], index: 2, kind: input, shape index: {}]   ;;  %s388_s3 = inlined_call_operand.vmem [shape: f32[4,1], index: 3, kind: input, shape index: {}]   ;;  %s389_s4 = inlined_call_operand.vmem [shape: bf16[4,512], index: 4, kind: output, shape index: {}]  }
   0x1   :  { %v290_v0 = vld [vmem:[%s385_s0 + $0x4] ss:$16 sps:$4 sm:$0xff]   ;;  %128 = vmatprep.mubr.bf16.mxu0 %v308_v1  ;;  %169 = vmatprep.mubr.bf16.mxu1 %v308_v1  ;;  %v292_v2 = vld [vmem:[%s385_s0 + $0xc] ss:$16 sps:$4 sm:$0xff]   ;;  %v294_v3 = vld [vmem:[%s385_s0] ss:$16 sps:$4 sm:$0xff]   ;;  %v250_v62 = vlaneseq }
   0x2   :  { %288 = vset.pattern.permute.xlu1 %v308_v1  ;;  %289 = vset.pattern.permute.xlu0 %v308_v1  ;;  %v295_v4 = vld [vmem:[%s385_s0 + $0x8] ss:$16 sps:$4 sm:$0xff]   ;;  %v296_v5 = vld [vmem:[%s385_s0 + $0x24] ss:$16 sps:$4 sm:$0xff]   ;;  %v298_v6 = vld [vmem:[%s385_s0 + $0x2c] ss:$16 sps:$4 sm:$0xff]  }
   0x3   :  { %96 = vmatprep.subr.bf16.mxu0 %v290_v0  ;;  %137 = vmatprep.subr.bf16.mxu1 %v292_v2  ;;  %v300_v7 = vld [vmem:[%s385_s0 + $0x20] ss:$16 sps:$4 sm:$0xff]   ;;  %v301_v8 = vld [vmem:[%s385_s0 + $0x28] ss:$16 sps:$4 sm:$0xff]   ;;  %v309_v60 = vmov 1983009808  }
   0x4   :  { %97 = vmatpush1.bf16.msra.mxu0 %v294_v3  ;;  %138 = vmatpush1.bf16.msra.mxu1 %v295_v4  ;;  %v27_v9 = vld [vmem:[%s385_s0 + $0x40] sm:$0x33]  ;;  %v28_v10 = vld [vmem:[%s385_s0 + $0x48] sm:$0x33]  ;;  %v248_v61 = vunpack.c.l.s4 %v309_v60  ;;  %v251_v1 = vshrl.u32 %v250_v62, 7 }
   0x5   :  { %98 = vmatprep.subr.bf16.mxu0 %v296_v5  ;;  %139 = vmatprep.subr.bf16.mxu1 %v298_v6  ;;  %v277_v11 = vcombine.high %v27_v9, %v27_v9  ;;  %v279_v12 = vcombine.high %v28_v10, %v28_v10  ;;  %v276_v13 = vcombine.low %v27_v9, %v27_v9  ;;  %v18_v17 = vld [vmem:[%s386_s1] sm:$0x3] }
   0x6   :  { %v278_v14 = vcombine.low %v28_v10, %v28_v10  ;;  %v206_v56 = vld [vmem:[%s387_s2] sm:$0xf]  ;;  %v249_v0 = vunpack.c.0.s8 %v248_v61 }
   0x7   :  { %v85_v15 = vsel %vm83_vm0, %v276_v13, 0  ;;  %v223_v59 = vld [vmem:[%s388_s3] sm:$0xf] }
   0x8   :  { %99 = vmatpush1.bf16.msra.mxu0 %v300_v7  ;;  %140 = vmatpush1.bf16.msra.mxu1 %v301_v8  ;;  %v91_v16 = vsel %vm83_vm0, %v278_v14, 0 }
   0x9   :  { %280 = vmatprep.subr.msk.bf16.mxu0 %vm83_vm0, %v277_v11  ;;  %282 = vmatprep.subr.msk.bf16.mxu1 %vm83_vm0, %v279_v12  ;;  %v252_v11 = vsub.s32 %v249_v0, %v251_v1 }
   0xc   :  { %101 = vmatpush1.bf16.msra.mxu0 %v85_v15  ;;  %142 = vmatpush1.bf16.msra.mxu1 %v91_v16 }
   0xf   :  { %281 = vmatmul.mubr.msk.bf16.vlgmr.msra.gmra.mrb[0].mxu0 %vm79_vm1, %v18_v17  ;;  %283 = vmatmul.mubr.msk.bf16.vlgmr.msra.gmra.mrb[0].mxu1 %vm79_vm1, %v18_v17 }
  0xe2   :  { %v130_v18 = vpop.f32.mrb[0].mxu0  ;;  %v171_v19 = vpop.f32.mrb[0].mxu1 }
  0xe3   :  { %v179_v20 = vsel %vm178_vm2, %v130_v18, 0.0  ;;  %v189_v21 = vmul.f32 %v130_v18, %v130_v18  ;;  %v191_v22 = vmul.f32 %v171_v19, %v171_v19  ;;  %v132_v23 = vpop.f32.mrb[1].mxu0  ;;  %v173_v24 = vpop.f32.mrb[1].mxu1  ;;  %v182_v29 = vsel %vm178_vm2, %v171_v19, 0.0 }
  0xe4   :  { %v180_v25 = vsel %vm178_vm2, %v132_v23, 0.0  ;;  %v190_v26 = vmul.f32 %v132_v23, %v132_v23  ;;  %v134_v27 = vpop.f32.mrb[2].mxu0  ;;  %v175_v28 = vpop.f32.mrb[2].mxu1  ;;  %v192_v35 = vmul.f32 %v173_v24, %v173_v24  ;;  %v184_v39 = vsel %vm178_vm2, %v173_v24, 0.0 }
  0xe5   :  { %v193_v30 = vsel %vm178_vm2, %v189_v21, 0.0  ;;  %v135_v31 = vpop.f32.mrb[3].mxu0  ;;  %v176_v32 = vpop.f32.mrb[3].mxu1  ;;  %v181_v33 = vadd.f32 %v180_v25, %v179_v20  ;;  %v196_v36 = vsel %vm178_vm2, %v191_v22, 0.0 }
  0xe6   :  { %v194_v34 = vsel %vm178_vm2, %v190_v26, 0.0  ;;  %v198_v42 = vsel %vm178_vm2, %v192_v35, 0.0 }
  0xe7   :  { %v183_v37 = vadd.f32 %v182_v29, %v181_v33  ;;  %v195_v38 = vadd.f32 %v194_v34, %v193_v30 }
  0xe9   :  { %v185_v40 = vadd.f32 %v184_v39, %v183_v37  ;;  %v197_v41 = vadd.f32 %v196_v36, %v195_v38 }
  0xeb   :  { %186 = vadd.xlane.f32.xlu0 %v185_v40  ;;  %v199_v43 = vadd.f32 %v198_v42, %v197_v41 }
  0xef   :  { %200 = vadd.xlane.f32.xlu0 %v199_v43 }
 0x178   :  { %v187_v44 = vpop.xlane.xlu0 %186 }
 0x179   :  { %v188_v45 = vmul.f32 0.001953125, %v187_v44 }
 0x17b   :  { %v210_v46 = vsub.f32 %v130_v18, %v188_v45  ;;  %v211_v47 = vsub.f32 %v132_v23, %v188_v45  ;;  %v212_v48 = vsub.f32 %v171_v19, %v188_v45  ;;  %v213_v50 = vsub.f32 %v173_v24, %v188_v45 }
 0x17c   :  { %v201_v49 = vpop.xlane.xlu0 %200  ;;  %v203_v51 = vmul.f32 %v188_v45, %v188_v45 }
 0x17d   :  { %v202_v52 = vmul.f32 0.001953125, %v201_v49 }
 0x17f   :  { %v204_v53 = vsub.f32 %v202_v52, %v203_v51 }
 0x181   :  { %v205_v54 = vmax.f32 %v204_v53, 0.0 }
 0x183   :  { %v207_v55 = vadd.f32 1e-05, %v205_v54 }
 0x185   :  { %306 = vrsqrt.f32 %v207_v55 }
 0x18f   :  { %v307_v57 = vpop.eup %306 }
 0x190   :  { %v209_v58 = vmul.f32 %v307_v57, %v206_v56 }
 0x192   :  { %216 = vperm.xlu1 %288, %v209_v58  }
 0x196   :  { %226 = vperm.xlu1 %288, %v223_v59  }
 0x211   :  { %v217_v63 = vpop.permute.xlu1 %216 }
 0x212   :  { %v219_v2 = vmul.f32 %v217_v63, %v210_v46  ;;  %v220_v3 = vmul.f32 %v217_v63, %v211_v47  ;;  %v221_v4 = vmul.f32 %v217_v63, %v212_v48  ;;  %v222_v5 = vmul.f32 %v217_v63, %v213_v50 }
 0x215   :  { %v227_v6 = vpop.permute.xlu1 %226 }
 0x216   :  { %v229_v7 = vadd.f32 %v227_v6, %v219_v2  ;;  %v230_v8 = vadd.f32 %v227_v6, %v220_v3  ;;  %v231_v9 = vadd.f32 %v227_v6, %v221_v4  ;;  %v232_v10 = vadd.f32 %v227_v6, %v222_v5 }
 0x218   :  { %v233_v12 = vmax.f32 %v229_v7, 0.0  ;;  %v234_v13 = vmax.f32 %v230_v8, 0.0  ;;  %v235_v14 = vmax.f32 %v231_v9, 0.0  ;;  %v236_v15 = vmax.f32 %v232_v10, 0.0 }
 0x21a   :  { %v284_v16 = vpack.c.bf16 %v234_v13, %v233_v12  ;;  %v285_v17 = vpack.c.bf16 %v236_v15, %v235_v14 }
 0x21c   :  { %v253_v18 = vrot.slane %v284_v16, %v252_v11  ;;  %v260_v19 = vrot.slane %v285_v17, %v252_v11 }
 0x21e   :  { %v261_v20 = vcombine.low %v253_v18, %v260_v19 }
 0x220   :  { %263 = vst [vmem:[%s389_s4] sm:$0xff] %v261_v20 }

// kernel: ib_forward.12
= control target key start
LH: loop header
LB: loop body
LE: loop exit
PB: predicated region body
PF: predicated region fallthrough
CT: control target
= control target key end

     0   :  { %v359_v1 = vmov 0   ;;  %vm88_vm0 = vcmask 1041408   ;;  %vm84_vm1 = vcmask 293888   ;;  %vm183_vm2 = vcmask 1043456   ;;  %s452_s0 = inlined_call_operand.vmem [shape: bf16[36,512], index: 0, kind: input, shape index: {}]   ;;  %s453_s1 = inlined_call_operand.vmem [shape: bf16[4,36], index: 1, kind: input, shape index: {}]   ;;  %s454_s2 = inlined_call_operand.vmem [shape: f32[4,1], index: 2, kind: input, shape index: {}]   ;;  %s455_s3 = inlined_call_operand.vmem [shape: f32[4,1], index: 3, kind: input, shape index: {}]   ;;  %s456_s4 = inlined_call_operand.vmem [shape: bf16[4,512], index: 4, kind: input, shape index: {}]   ;;  %s457_s5 = inlined_call_operand.vmem [shape: bf16[4,512], index: 5, kind: output, shape index: {0}]   ;;  %s458_s6 = inlined_call_operand.vmem [shape: bf16[4,512], index: 6, kind: output, shape index: {1}]  }
   0x1   :  { %v341_v0 = vld [vmem:[%s452_s0 + $0x4] ss:$16 sps:$4 sm:$0xff]   ;;  %133 = vmatprep.mubr.bf16.mxu0 %v359_v1  ;;  %174 = vmatprep.mubr.bf16.mxu1 %v359_v1  ;;  %v343_v2 = vld [vmem:[%s452_s0 + $0xc] ss:$16 sps:$4 sm:$0xff]   ;;  %v345_v3 = vld [vmem:[%s452_s0] ss:$16 sps:$4 sm:$0xff]   ;;  %v255_v63 = vlaneseq }
   0x2   :  { %339 = vset.pattern.permute.xlu1 %v359_v1  ;;  %340 = vset.pattern.permute.xlu0 %v359_v1  ;;  %v346_v4 = vld [vmem:[%s452_s0 + $0x8] ss:$16 sps:$4 sm:$0xff]   ;;  %v347_v5 = vld [vmem:[%s452_s0 + $0x24] ss:$16 sps:$4 sm:$0xff]   ;;  %v349_v6 = vld [vmem:[%s452_s0 + $0x2c] ss:$16 sps:$4 sm:$0xff]  }
   0x3   :  { %101 = vmatprep.subr.bf16.mxu0 %v341_v0  ;;  %142 = vmatprep.subr.bf16.mxu1 %v343_v2  ;;  %v351_v7 = vld [vmem:[%s452_s0 + $0x20] ss:$16 sps:$4 sm:$0xff]   ;;  %v352_v8 = vld [vmem:[%s452_s0 + $0x28] ss:$16 sps:$4 sm:$0xff]   ;;  %v360_v61 = vmov 1983009808  }
   0x4   :  { %102 = vmatpush1.bf16.msra.mxu0 %v345_v3  ;;  %143 = vmatpush1.bf16.msra.mxu1 %v346_v4  ;;  %v32_v9 = vld [vmem:[%s452_s0 + $0x40] sm:$0x33]  ;;  %v33_v10 = vld [vmem:[%s452_s0 + $0x48] sm:$0x33]  ;;  %v253_v62 = vunpack.c.l.s4 %v360_v61  ;;  %v256_v3 = vshrl.u32 %v255_v63, 7 }
   0x5   :  { %103 = vmatprep.subr.bf16.mxu0 %v347_v5  ;;  %144 = vmatprep.subr.bf16.mxu1 %v349_v6  ;;  %v326_v11 = vcombine.high %v32_v9, %v32_v9  ;;  %v328_v12 = vcombine.high %v33_v10, %v33_v10  ;;  %v325_v13 = vcombine.low %v32_v9, %v32_v9  ;;  %v23_v17 = vld [vmem:[%s453_s1] sm:$0x3] }
   0x6   :  { %v327_v14 = vcombine.low %v33_v10, %v33_v10  ;;  %v211_v56 = vld [vmem:[%s454_s2] sm:$0xf]  ;;  %v254_v2 = vunpack.c.0.s8 %v253_v62 }
   0x7   :  { %v90_v15 = vsel %vm88_vm0, %v325_v13, 0  ;;  %v228_v59 = vld [vmem:[%s455_s3] sm:$0xf] }
   0x8   :  { %104 = vmatpush1.bf16.msra.mxu0 %v351_v7  ;;  %145 = vmatpush1.bf16.msra.mxu1 %v352_v8  ;;  %v96_v16 = vsel %vm88_vm0, %v327_v14, 0  ;;  %v269_v60 = vld [vmem:[%s456_s4] sm:$0xff] }
   0x9   :  { %329 = vmatprep.subr.msk.bf16.mxu0 %vm88_vm0, %v326_v11  ;;  %331 = vmatprep.subr.msk.bf16.mxu1 %vm88_vm0, %v328_v12  ;;  %v270_v1 = vunpack.c.l.bf16 %v269_v60  ;;  %v271_v4 = vunpack.c.h.bf16 %v269_v60 }
   0xb   :  { %v274_v9 = vcombine.high %v270_v1, %v270_v1 }
   0xc   :  { %106 = vmatpush1.bf16.msra.mxu0 %v90_v15  ;;  %147 = vmatpush1.bf16.msra.mxu1 %v96_v16  ;;  %v257_v15 = vsub.s32 %v254_v2, %v256_v3  ;;  %v275_v16 = vcombine.high %v271_v4, %v271_v4 }
   0xf   :  { %330 = vmatmul.mubr.msk.bf16.vlgmr.msra.gmra.mrb[0].mxu0 %vm84_vm1, %v23_v17  ;;  %332 = vmatmul.mubr.msk.bf16.vlgmr.msra.gmra.mrb[0].mxu1 %vm84_vm1, %v23_v17 }
  0xe2   :  { %v135_v18 = vpop.f32.mrb[0].mxu0  ;;  %v176_v19 = vpop.f32.mrb[0].mxu1 }
  0xe3   :  { %v184_v20 = vsel %vm183_vm2, %v135_v18, 0.0  ;;  %v194_v21 = vmul.f32 %v135_v18, %v135_v18  ;;  %v196_v22 = vmul.f32 %v176_v19, %v176_v19  ;;  %v137_v23 = vpop.f32.mrb[1].mxu0  ;;  %v178_v24 = vpop.f32.mrb[1].mxu1  ;;  %v187_v29 = vsel %vm183_vm2, %v176_v19, 0.0 }
  0xe4   :  { %v185_v25 = vsel %vm183_vm2, %v137_v23, 0.0  ;;  %v195_v26 = vmul.f32 %v137_v23, %v137_v23  ;;  %v139_v27 = vpop.f32.mrb[2].mxu0  ;;  %v180_v28 = vpop.f32.mrb[2].mxu1  ;;  %v197_v35 = vmul.f32 %v178_v24, %v178_v24  ;;  %v189_v39 = vsel %vm183_vm2, %v178_v24, 0.0 }
  0xe5   :  { %v198_v30 = vsel %vm183_vm2, %v194_v21, 0.0  ;;  %v140_v31 = vpop.f32.mrb[3].mxu0  ;;  %v181_v32 = vpop.f32.mrb[3].mxu1  ;;  %v186_v33 = vadd.f32 %v185_v25, %v184_v20  ;;  %v201_v36 = vsel %vm183_vm2, %v196_v22, 0.0 }
  0xe6   :  { %v199_v34 = vsel %vm183_vm2, %v195_v26, 0.0  ;;  %v203_v42 = vsel %vm183_vm2, %v197_v35, 0.0 }
  0xe7   :  { %v188_v37 = vadd.f32 %v187_v29, %v186_v33  ;;  %v200_v38 = vadd.f32 %v199_v34, %v198_v30 }
  0xe9   :  { %v190_v40 = vadd.f32 %v189_v39, %v188_v37  ;;  %v202_v41 = vadd.f32 %v201_v36, %v200_v38 }
  0xeb   :  { %191 = vadd.xlane.f32.xlu0 %v190_v40  ;;  %v204_v43 = vadd.f32 %v203_v42, %v202_v41 }
  0xef   :  { %205 = vadd.xlane.f32.xlu0 %v204_v43 }
 0x178   :  { %v192_v44 = vpop.xlane.xlu0 %191 }
 0x179   :  { %v193_v45 = vmul.f32 0.001953125, %v192_v44 }
 0x17b   :  { %v215_v46 = vsub.f32 %v135_v18, %v193_v45  ;;  %v216_v47 = vsub.f32 %v137_v23, %v193_v45  ;;  %v217_v48 = vsub.f32 %v176_v19, %v193_v45  ;;  %v218_v50 = vsub.f32 %v178_v24, %v193_v45 }
 0x17c   :  { %v206_v49 = vpop.xlane.xlu0 %205  ;;  %v208_v51 = vmul.f32 %v193_v45, %v193_v45 }
 0x17d   :  { %v207_v52 = vmul.f32 0.001953125, %v206_v49 }
 0x17f   :  { %v209_v53 = vsub.f32 %v207_v52, %v208_v51 }
 0x181   :  { %v210_v54 = vmax.f32 %v209_v53, 0.0 }
 0x183   :  { %v212_v55 = vadd.f32 1e-05, %v210_v54 }
 0x185   :  { %357 = vrsqrt.f32 %v212_v55 }
 0x18f   :  { %v358_v57 = vpop.eup %357 }
 0x190   :  { %v214_v58 = vmul.f32 %v358_v57, %v211_v56 }
 0x192   :  { %221 = vperm.xlu1 %339, %v214_v58  }
 0x196   :  { %231 = vperm.xlu1 %339, %v228_v59  }
 0x211   :  { %v222_v0 = vpop.permute.xlu1 %221 }
 0x212   :  { %v224_v5 = vmul.f32 %v222_v0, %v215_v46  ;;  %v225_v6 = vmul.f32 %v222_v0, %v216_v47  ;;  %v226_v7 = vmul.f32 %v222_v0, %v217_v48  ;;  %v227_v8 = vmul.f32 %v222_v0, %v218_v50 }
 0x215   :  { %v232_v10 = vpop.permute.xlu1 %231 }
 0x216   :  { %v234_v11 = vadd.f32 %v232_v10, %v224_v5  ;;  %v235_v12 = vadd.f32 %v232_v10, %v225_v6  ;;  %v236_v13 = vadd.f32 %v232_v10, %v226_v7  ;;  %v237_v14 = vadd.f32 %v232_v10, %v227_v8 }
 0x218   :  { %v238_v17 = vmax.f32 %v234_v11, 0.0  ;;  %v239_v18 = vmax.f32 %v235_v12, 0.0  ;;  %v240_v19 = vmax.f32 %v236_v13, 0.0  ;;  %v241_v20 = vmax.f32 %v237_v14, 0.0 }
 0x21a   :  { %v333_v21 = vpack.c.bf16 %v239_v18, %v238_v17  ;;  %v334_v22 = vpack.c.bf16 %v241_v20, %v240_v19  ;;  %v278_v23 = vadd.f32 %v270_v1, %v238_v17  ;;  %v279_v24 = vadd.f32 %v274_v9, %v239_v18 }
 0x21b   :  { %v280_v25 = vadd.f32 %v271_v4, %v240_v19  ;;  %v281_v26 = vadd.f32 %v275_v16, %v241_v20 }
 0x21c   :  { %v258_v27 = vrot.slane %v333_v21, %v257_v15  ;;  %v265_v28 = vrot.slane %v334_v22, %v257_v15  ;;  %v335_v29 = vpack.c.bf16 %v279_v24, %v278_v23 }
 0x21d   :  { %v336_v30 = vpack.c.bf16 %v281_v26, %v280_v25 }
 0x21e   :  { %v266_v31 = vcombine.low %v258_v27, %v265_v28  ;;  %v298_v32 = vrot.slane %v335_v29, %v257_v15 }
 0x21f   :  { %v305_v33 = vrot.slane %v336_v30, %v257_v15 }
 0x220   :  { %268 = vst [vmem:[%s457_s5] sm:$0xff] %v266_v31 }
 0x221   :  { %v306_v34 = vcombine.low %v298_v32, %v305_v33 }
 0x223   :  { %308 = vst [vmem:[%s458_s6] sm:$0xff] %v306_v34 }

</bundles_post_ra>
